<compile_context>
chip_gen: v6e
topology: v6e:2x2x1
jax: 0.10.0
libtpu: 0.0.40
codegen_flags: <defaults>
</compile_context>

<pallas_src>
import jax
import jax.numpy as jnp
from jax.experimental import pallas as pl
from jax.experimental.pallas import tpu as pltpu


_LANE = 128                              # vreg lane width
_MAX_TILE_BYTES = 4 * 1024 * 1024        # per-buffer tile cap (review: 4 MiB)
_VMEM_LIMIT_BYTES = 32 * 1024 * 1024     # explicit scoped-VMEM budget
                                         # (4 live 4 MiB buffers = 16 MiB + headroom;
                                         #  safe on v5e/v6e/v7x)


def _packed_sublane_align(dtype) -> int:
    """Native packed-tile sublane count: 8 (4B), 16 (2B), 32 (1B) dtypes."""
    itemsize = jnp.dtype(dtype).itemsize
    return max(8, 32 // max(1, itemsize))


# ----------------------------------------------------------------------------
# Path A: direct HBM -> HBM DMA copy (no VMEM/vreg round trip).
# ----------------------------------------------------------------------------
def _dma_copy_kernel(x_hbm_ref, o_hbm_ref):
    def body(sem):
        cp = pltpu.make_async_copy(x_hbm_ref, o_hbm_ref, sem)
        cp.start()
        cp.wait()

    pl.run_scoped(body, pltpu.SemaphoreType.DMA)


def _pallas_dma_copy(x):
    return pl.pallas_call(
        _dma_copy_kernel,
        out_shape=jax.ShapeDtypeStruct(x.shape, x.dtype),
        in_specs=[pl.BlockSpec(memory_space=pl.ANY)],
        out_specs=pl.BlockSpec(memory_space=pl.ANY),
        cost_estimate=pl.CostEstimate(
            flops=0,
            transcendentals=0,
            bytes_accessed=2 * x.size * jnp.dtype(x.dtype).itemsize,
        ),
    )(x)


# ----------------------------------------------------------------------------
# Path B: lane-dense tiled VMEM copy (useful if this ever fuses with compute).
# ----------------------------------------------------------------------------
def _copy_kernel(x_ref, o_ref):
    # Identity pass-through: the base class defines no transformation of x.
    o_ref[...] = x_ref[...]


def _pallas_tiled_copy(x):
    total = x.size
    itemsize = jnp.dtype(x.dtype).itemsize
    if total == 0 or total % _LANE != 0:
        # Awkward sizes: an XLA copy is already at HBM roofline.
        return jnp.copy(x)

    rows = total // _LANE
    align = _packed_sublane_align(x.dtype)
    x2d = x.reshape(rows, _LANE)  # lane-dense: last dim exactly 128

    # Per-buffer tile cap (multiple of the packed sublane tile).
    bytes_per_row = _LANE * itemsize
    cap_rows = max(align, (_MAX_TILE_BYTES // bytes_per_row) // align * align)

    # Aim for >= 2 grid steps (megacore sharding on v7x), capped at cap_rows.
    target_rows = pl.cdiv(pl.cdiv(rows, 2), align) * align
    tile_rows = int(min(cap_rows, max(align, target_rows)))
    if tile_rows >= rows:
        # Single full-extent block (always a legal block shape).
        tile_rows = rows

    # cdiv grid: the final partial block (if any) is masked by Pallas —
    # no degenerate small-tile fallback for awkward row counts.
    grid = (pl.cdiv(rows, tile_rows),)

    out2d = pl.pallas_call(
        _copy_kernel,
        out_shape=jax.ShapeDtypeStruct((rows, _LANE), x.dtype),
        grid=grid,
        in_specs=[pl.BlockSpec((tile_rows, _LANE), lambda i: (i, 0))],
        out_specs=pl.BlockSpec((tile_rows, _LANE), lambda i: (i, 0)),
        compiler_params=pltpu.CompilerParams(
            dimension_semantics=("parallel",),
            vmem_limit_bytes=_VMEM_LIMIT_BYTES,
        ),
        cost_estimate=pl.CostEstimate(
            flops=0,
            transcendentals=0,
            bytes_accessed=2 * total * itemsize,
        ),
    )(x2d)

    return out2d.reshape(x.shape)


# ----------------------------------------------------------------------------
# Forward
# ----------------------------------------------------------------------------
def reconstructor_base_forward(x, lengths, node_event,
                               materialize_copy=False, copy_mode="dma"):
    """Pallas stand-in for ReconstructorBase.forward.

    `lengths` and `node_event` are accepted for signature parity but are not
    consumed — the abstract base class gives them no semantics.

    Default path returns `x` unchanged (zero cost — no kernel, no HBM traffic).
    With materialize_copy=True a distinct output buffer is produced either by
    a direct HBM->HBM DMA ("dma", default) or a lane-dense tiled VMEM copy
    ("tiled").
    """
    del lengths, node_event  # unused by the abstract base class

    if not materialize_copy:
        return x
    if copy_mode == "dma":
        return _pallas_dma_copy(x)
    return _pallas_tiled_copy(x)


if __name__ == "__main__":
    key = jax.random.PRNGKey(0)
    kx, kl, kn, kr = jax.random.split(key, 4)

    # Small, deterministic example inputs consistent with the signature.
    B, C, H, W = 2, 4, 16, 16
    S = 8  # synthetic sequence length for node_event

    x = jax.random.normal(kx, (B, C, H, W), dtype=jnp.float32)
    lengths = jax.random.randint(kl, (B,), minval=1, maxval=S + 1, dtype=jnp.int32)
    node_event = jax.random.normal(kn, (B, S, C), dtype=jnp.float32)

    # 1) Default (recommended) path: no kernel, returns x.
    out_fast = reconstructor_base_forward(x, lengths, node_event)

    # 2) Kernel-boundary path: direct HBM->HBM DMA copy.
    out_dma = reconstructor_base_forward(x, lengths, node_event,
                                         materialize_copy=True, copy_mode="dma")
    out_dma = jax.block_until_ready(out_dma)

    # 3) Kernel-boundary path: lane-dense tiled VMEM copy (f32, 2 grid steps).
    out_tiled = reconstructor_base_forward(x, lengths, node_event,
                                           materialize_copy=True, copy_mode="tiled")
    out_tiled = jax.block_until_ready(out_tiled)

    # 4) Tiled path, bf16 (exercises dtype-dependent sublane alignment = 16).
    x_bf16 = x.astype(jnp.bfloat16)
    out_bf16 = reconstructor_base_forward(x_bf16, lengths, node_event,
                                          materialize_copy=True, copy_mode="tiled")
    out_bf16 = jax.block_until_ready(out_bf16)

    # 5) Tiled path, row count (24) not divisible by the chosen tile (16):
    #    exercises the cdiv grid with a masked final partial block.
    x_ragged = jax.random.normal(kr, (3, 8, 128), dtype=jnp.float32)
    out_ragged = reconstructor_base_forward(x_ragged, lengths, node_event,
                                            materialize_copy=True, copy_mode="tiled")
    out_ragged = jax.block_until_ready(out_ragged)

    # Sanity: every path must preserve its input exactly.
    assert out_fast.shape == x.shape and out_fast.dtype == x.dtype
    assert out_dma.shape == x.shape and out_dma.dtype == x.dtype
    assert out_tiled.shape == x.shape and out_tiled.dtype == x.dtype
    assert out_bf16.shape == x_bf16.shape and out_bf16.dtype == x_bf16.dtype
    assert out_ragged.shape == x_ragged.shape and out_ragged.dtype == x_ragged.dtype
    assert bool(jnp.all(out_fast == x))
    assert bool(jnp.all(out_dma == x))
    assert bool(jnp.all(out_tiled == x))
    assert bool(jnp.all(out_bf16 == x_bf16))
    assert bool(jnp.all(out_ragged == x_ragged))

    print("KERNEL_OK")
</pallas_src>

<mosaic_0001>
module attributes {stable_mosaic.version = 11 : i64} {
  func.func @_dma_copy_kernel(%arg0: memref<2x4x16x16xf32, #tpu.memory_space<any>>, %arg1: memref<2x4x16x16xf32, #tpu.memory_space<any>>) attributes {dimension_semantics = [], scalar_prefetch = 0 : i64, scratch_operands = 0 : i64, tpu.core_type = #tpu.core_type<tc>} {
    "tpu.region"() ({
      %0 = tpu.sem_alloc : memref<!tpu.dma_semaphore, #tpu.memory_space<semaphore_mem>>
      tpu.enqueue_dma source(%arg0 : memref<2x4x16x16xf32, #tpu.memory_space<any>>) target(%arg1 : memref<2x4x16x16xf32, #tpu.memory_space<any>>) target_semaphore(%0 : memref<!tpu.dma_semaphore, #tpu.memory_space<semaphore_mem>>)
      tpu.wait_dma2 semaphore(%0 : memref<!tpu.dma_semaphore, #tpu.memory_space<semaphore_mem>>) src(%arg0 : memref<2x4x16x16xf32, #tpu.memory_space<any>>) dst(%arg1 : memref<2x4x16x16xf32, #tpu.memory_space<any>>)
      tpu.yield
    }) : () -> ()
    return
  }
}

</mosaic_0001>

<bundles_post_ra>
// kernel: tpu_custom_call.1
= control target key start
LH: loop header
LB: loop body
LE: loop exit
PB: predicated region body
PF: predicated region fallthrough
CT: control target
= control target key end

     0   :  { %s23_s6 = smov [#allocation2]   ;;  %s24_s7 = smov 131072   ;;  %s42_s0 = inlined_call_operand.hbm [shape: f32[2,4,16,16], index: 0, kind: input, shape index: {}]   ;;  %s43_s1 = inlined_call_operand.hbm [shape: f32[2,4,16,16], index: 1, kind: output, shape index: {}]  }
   0x1   :  { %s25_s8 = smov 0  }
   0x2   :  { %12 = dma.general %s42_s0, 2048, %s43_s1, %s23_s6, %s24_s7, [#allocation4], %s25_s8, 0  }
   0x3   :  { %21 = dma.done.wait [#allocation2], 2048 }
   0x4   :  { %22 = vsyncadd [#allocation2], 4294965248 }

</bundles_post_ra>
